<compile_context>
chip_gen: v7x
topology: tpu7x:2x2x1
jax: 0.10.0
libtpu: 0.0.40
codegen_flags: <defaults>
</compile_context>

<pallas_src>
import functools

import jax
import jax.numpy as jnp
import numpy as np
from jax.experimental import pallas as pl
from jax.experimental.pallas import tpu as pltpu


# ---------------------------------------------------------------------------
# Kernel 1: linear projection over row tiles.  y = x @ W_kmajor + b
# (W is pre-transposed once in the wrapper so the MXU gets a k-major operand
#  and no in-kernel transpose/relayout is needed.)
# ---------------------------------------------------------------------------
def linear_kernel(x_ref, w_ref, b_ref, o_ref):
    y = jnp.dot(x_ref[...], w_ref[...], preferred_element_type=jnp.float32)
    o_ref[...] = (y + b_ref[...]).astype(o_ref.dtype)


def linear_proj(x, w, b, *, tile_m=256):
    """x: (B, S, Din), w: (Dout, Din) [torch layout], b: (Dout,) -> (B, S, Dout).

    Flattens (B, S) into a single M axis and tiles it (256-row tiles for large
    M, full extent for small M) so the MXU sees one big GEMM instead of B tiny
    per-batch matmuls; the weight BlockSpec is constant so it stays VMEM-resident.
    """
    B, S, Din = x.shape
    Dout = w.shape[0]
    M = B * S

    x2 = x.reshape(M, Din)
    wt = jnp.transpose(w)          # (Din, Dout), static, done once at trace time
    b2 = b.reshape(1, Dout)

    tm = min(tile_m, M)
    Mp = pl.cdiv(M, tm) * tm
    if Mp != M:                    # pad rows so the grid divides evenly
        x2 = jnp.pad(x2, ((0, Mp - M), (0, 0)))

    y = pl.pallas_call(
        linear_kernel,
        out_shape=jax.ShapeDtypeStruct((Mp, Dout), x.dtype),
        grid=(Mp // tm,),
        in_specs=[
            pl.BlockSpec((tm, Din), lambda i: (i, 0)),
            pl.BlockSpec((Din, Dout), lambda i: (0, 0)),
            pl.BlockSpec((1, Dout), lambda i: (0, 0)),
        ],
        out_specs=pl.BlockSpec((tm, Dout), lambda i: (i, 0)),
        compiler_params=pltpu.CompilerParams(dimension_semantics=("parallel",)),
    )(x2, wt, b2)

    if Mp != M:
        y = y[:M]
    return y.reshape(B, S, Dout)


# ---------------------------------------------------------------------------
# Kernel 2: fused multi-head attention + output projection for one batch tile
# ---------------------------------------------------------------------------
def attn_out_kernel(q_ref, k_ref, v_ref, m_ref, wo_ref, bo_ref, o_ref, *,
                    H, d_k, scale, causal):
    q = q_ref[0]        # (Sq, d_model)
    k = k_ref[0]        # (Sk, d_model)
    v = v_ref[0]        # (Sk, d_model)
    m = m_ref[0]        # (1, Sk)   — 1.0 = keep, 0.0 = mask out
    wo = wo_ref[...]    # (d_model, d_model_Q)  (pre-transposed, k-major)
    bo = bo_ref[...]    # (1, d_model_Q)

    Sq = q.shape[0]
    Sk = k.shape[0]

    # Combined padding (+ optional causal) keep-mask, built once for all heads.
    keep = jnp.broadcast_to(m > 0.0, (Sq, Sk))
    if causal:
        row = jax.lax.broadcasted_iota(jnp.int32, (Sq, Sk), 0)
        col = jax.lax.broadcasted_iota(jnp.int32, (Sq, Sk), 1)
        keep = jnp.logical_and(keep, col <= row)

    acc = jnp.zeros((Sq, wo.shape[1]), jnp.float32)

    # Heads live on static lane slices of the projected activations; the output
    # projection is folded in per head (oh @ Wo[h]) so no (B,H,Sq,d_k) tensor or
    # head-axis transpose ever exists.
    for h in range(H):                       # static unroll; H is small
        sl = slice(h * d_k, (h + 1) * d_k)
        qh = q[:, sl] * scale                # fold 1/sqrt(d_k) into q (Sq*d_k muls)
        kh = k[:, sl]
        vh = v[:, sl]

        # q @ k^T without an explicit transpose (contract on the d_k axis).
        s = jax.lax.dot_general(
            qh, kh, (((1,), (1,)), ((), ())),
            preferred_element_type=jnp.float32)          # (Sq, Sk)
        s = jnp.where(keep, s, -1e9)

        # stable softmax; approx reciprocal runs on the otherwise-idle EUP slot.
        s = s - jnp.max(s, axis=-1, keepdims=True)
        p = jnp.exp(s)
        p = p * pl.reciprocal(jnp.sum(p, axis=-1, keepdims=True), approx=True)

        oh = jnp.dot(p.astype(vh.dtype), vh,
                     preferred_element_type=jnp.float32)  # (Sq, d_k)
        acc = acc + jnp.dot(oh, wo[sl, :],
                            preferred_element_type=jnp.float32)  # (Sq, d_model_Q)

    o_ref[0] = (acc + bo).astype(o_ref.dtype)


def mha_attention_fused(qp, kp, vp, mask_f, wo, bo, *, H, d_k, scale, causal):
    """qp: (B,Sq,d_model), kp/vp: (B,Sk,d_model), mask_f: (B,1,Sk) float32.
    Returns the final projected output (B, Sq, d_model_Q)."""
    B, Sq, d_model = qp.shape
    Sk = kp.shape[1]
    Dq_out = wo.shape[0]

    wo_t = jnp.transpose(wo)       # (d_model, d_model_Q), static
    bo2 = bo.reshape(1, Dq_out)

    kern = functools.partial(attn_out_kernel, H=H, d_k=d_k, scale=scale,
                             causal=causal)
    return pl.pallas_call(
        kern,
        out_shape=jax.ShapeDtypeStruct((B, Sq, Dq_out), qp.dtype),
        grid=(B,),
        in_specs=[
            pl.BlockSpec((1, Sq, d_model), lambda b: (b, 0, 0)),
            pl.BlockSpec((1, Sk, d_model), lambda b: (b, 0, 0)),
            pl.BlockSpec((1, Sk, d_model), lambda b: (b, 0, 0)),
            pl.BlockSpec((1, 1, Sk), lambda b: (b, 0, 0)),
            pl.BlockSpec((d_model, Dq_out), lambda b: (0, 0)),
            pl.BlockSpec((1, Dq_out), lambda b: (0, 0)),
        ],
        out_specs=pl.BlockSpec((1, Sq, Dq_out), lambda b: (b, 0, 0)),
        compiler_params=pltpu.CompilerParams(dimension_semantics=("parallel",)),
    )(qp, kp, vp, mask_f, wo_t, bo2)


# ---------------------------------------------------------------------------
# Parameter init (deterministic, PyTorch nn.Linear-like uniform)
# ---------------------------------------------------------------------------
def init_params(key, d_model_Q, d_model_K, d_model_V, H, d_model=None):
    if d_model is None:
        d_model = d_model_Q
    assert d_model % H == 0
    ks = jax.random.split(key, 8)

    def lin(kw, kb, fan_out, fan_in):
        bound = 1.0 / np.sqrt(fan_in)
        w = jax.random.uniform(kw, (fan_out, fan_in), jnp.float32, -bound, bound)
        b = jax.random.uniform(kb, (fan_out,), jnp.float32, -bound, bound)
        return w, b

    wq, bq = lin(ks[0], ks[1], d_model, d_model_Q)
    wk, bk = lin(ks[2], ks[3], d_model, d_model_K)
    wv, bv = lin(ks[4], ks[5], d_model, d_model_V)
    wo, bo = lin(ks[6], ks[7], d_model_Q, d_model)
    return dict(
        H=H, d_model=d_model,
        wq=wq, bq=bq, wk=wk, bk=bk, wv=wv, bv=bv, wo=wo, bo=bo,
    )


# ---------------------------------------------------------------------------
# Full forward: 3 projection calls + 1 fused attention+output-projection call.
# No XLA transposes, no (B,H,Sq,d_k) intermediate in HBM.
# ---------------------------------------------------------------------------
def multiheaded_attention_forward(params, Q, K, V, mask, causal=False):
    H = params["H"]
    d_model = params["d_model"]
    d_k = d_model // H

    Qp = linear_proj(Q, params["wq"], params["bq"])   # (B, Sq, d_model)
    Kp = linear_proj(K, params["wk"], params["bk"])   # (B, Sk, d_model)
    Vp = linear_proj(V, params["wv"], params["bv"])   # (B, Sv, d_model)

    mask_f = mask.astype(jnp.float32)                 # (B, 1, Sk)

    out = mha_attention_fused(
        Qp, Kp, Vp, mask_f, params["wo"], params["bo"],
        H=H, d_k=d_k, scale=1.0 / np.sqrt(d_k), causal=causal)
    return out                                        # (B, Sq, d_model_Q)


# ---------------------------------------------------------------------------
# Pure-JAX reference (mirrors the PyTorch code) for a correctness check
# ---------------------------------------------------------------------------
def reference_forward(params, Q, K, V, mask, causal=False):
    B, Sq, _ = Q.shape
    H = params["H"]
    d_model = params["d_model"]
    d_k = d_model // H

    Qp = Q @ params["wq"].T + params["bq"]
    Kp = K @ params["wk"].T + params["bk"]
    Vp = V @ params["wv"].T + params["bv"]

    qh = Qp.reshape(B, -1, H, d_k).transpose(0, 2, 1, 3)
    kh = Kp.reshape(B, -1, H, d_k).transpose(0, 2, 1, 3)
    vh = Vp.reshape(B, -1, H, d_k).transpose(0, 2, 1, 3)

    s = jnp.einsum("bhqd,bhkd->bhqk", qh, kh) / np.sqrt(d_k)
    m = mask[:, None, :, :]                                # (B,1,1,Sk)
    if causal:
        Sk = s.shape[-1]
        cm = jnp.tril(jnp.ones((Sk, Sk), bool))[None, None]
        s = jnp.where(cm, s, -1e9)
    s = jnp.where(m, s, -1e9)
    p = jax.nn.softmax(s, axis=-1)
    o = jnp.einsum("bhqk,bhkd->bhqd", p, vh)
    o = o.transpose(0, 2, 1, 3).reshape(B, Sq, d_model)
    return o @ params["wo"].T + params["bo"]


if __name__ == "__main__":
    key = jax.random.PRNGKey(0)
    k_par, kq, kk, kv = jax.random.split(key, 4)

    # Small shapes consistent with the module's forward.
    B, Sq, Sk = 2, 8, 8
    d_model_Q, d_model_K, d_model_V, H = 32, 20, 24, 4

    params = init_params(k_par, d_model_Q, d_model_K, d_model_V, H)

    Q = jax.random.normal(kq, (B, Sq, d_model_Q), jnp.float32)
    K = jax.random.normal(kk, (B, Sk, d_model_K), jnp.float32)
    V = jax.random.normal(kv, (B, Sk, d_model_V), jnp.float32)

    # mask: (B, 1, Sk) — True = attend, False = masked out (padding-style)
    lengths = jnp.array([Sk, Sk - 3])
    mask = (jnp.arange(Sk)[None, None, :] < lengths[:, None, None])

    out = multiheaded_attention_forward(params, Q, K, V, mask, causal=False)
    out = jax.block_until_ready(out)

    ref = reference_forward(params, Q, K, V, mask, causal=False)
    # approx=True reciprocal (EUP vrcp) introduces ~2^-12 relative error; 1e-3
    # tolerance comfortably covers it while still catching real bugs.
    np.testing.assert_allclose(np.asarray(out), np.asarray(ref), atol=1e-3, rtol=1e-3)

    print("KERNEL_OK")
</pallas_src>

<mosaic_0001>
module attributes {stable_mosaic.version = 11 : i64} {
  func.func @linear_kernel(%arg0: i32, %arg1: memref<16x32xf32, #tpu.memory_space<vmem>>, %arg2: memref<32x32xf32, #tpu.memory_space<vmem>>, %arg3: memref<1x32xf32, #tpu.memory_space<vmem>>, %arg4: memref<16x32xf32, #tpu.memory_space<vmem>>) attributes {dimension_semantics = [#tpu.dimension_semantics<parallel>], iteration_bounds = array<i64: 1>, scalar_prefetch = 0 : i64, scratch_operands = 0 : i64, tpu.core_type = #tpu.core_type<tc>, window_params = [{transform_indices = @transform_0, window_bounds = array<i64: 16, 32>}, {pipeline_mode = #tpu.pipeline_mode<synchronous>, transform_indices = @transform_1, window_bounds = array<i64: 32, 32>}, {pipeline_mode = #tpu.pipeline_mode<synchronous>, transform_indices = @transform_2, window_bounds = array<i64: 1, 32>}, {transform_indices = @transform_3, window_bounds = array<i64: 16, 32>}]} {
    %c0 = arith.constant 0 : index
    %c0_0 = arith.constant 0 : index
    %0 = vector.load %arg1[%c0, %c0_0] : memref<16x32xf32, #tpu.memory_space<vmem>>, vector<16x32xf32>
    %c0_1 = arith.constant 0 : index
    %c0_2 = arith.constant 0 : index
    %1 = vector.load %arg2[%c0_1, %c0_2] : memref<32x32xf32, #tpu.memory_space<vmem>>, vector<32x32xf32>
    %cst = arith.constant dense<0.000000e+00> : vector<16x32xf32>
    %2 = tpu.matmul %0, %1, %cst {dimension_numbers = #tpu.dot_dimension_numbers<[1], [0], [0], [1], [0, 0, 1, 1], [], []>} : vector<16x32xf32>, vector<32x32xf32>, vector<16x32xf32> -> vector<16x32xf32>
    %c0_3 = arith.constant 0 : index
    %c0_4 = arith.constant 0 : index
    %3 = vector.load %arg3[%c0_3, %c0_4] : memref<1x32xf32, #tpu.memory_space<vmem>>, vector<1x32xf32>
    %4 = vector.broadcast %3 : vector<1x32xf32> to vector<16x32xf32>
    %5 = arith.addf %2, %4 : vector<16x32xf32>
    %c0_5 = arith.constant 0 : index
    %c0_6 = arith.constant 0 : index
    %6 = vector.load %arg4[%c0_5, %c0_6] : memref<16x32xf32, #tpu.memory_space<vmem>>, vector<16x32xf32>
    tpu.vector_store %arg4[%c0_5, %c0_6], %5 {strides = array<i32>} : memref<16x32xf32, #tpu.memory_space<vmem>>, vector<16x32xf32>,
    return
  }
  func.func @transform_0(%arg0: i32) -> (i32, i32) {
    %c0_i32 = arith.constant 0 : i32
    %c0_i32_0 = arith.constant 0 : i32
    return %arg0, %c0_i32 : i32, i32
  }
  func.func @transform_1(%arg0: i32) -> (i32, i32) {
    %c0_i32 = arith.constant 0 : i32
    %c0_i32_0 = arith.constant 0 : i32
    %c0_i32_1 = arith.constant 0 : i32
    return %c0_i32, %c0_i32_0 : i32, i32
  }
  func.func @transform_2(%arg0: i32) -> (i32, i32) {
    %c0_i32 = arith.constant 0 : i32
    %c0_i32_0 = arith.constant 0 : i32
    %c0_i32_1 = arith.constant 0 : i32
    return %c0_i32, %c0_i32_0 : i32, i32
  }
  func.func @transform_3(%arg0: i32) -> (i32, i32) {
    %c0_i32 = arith.constant 0 : i32
    %c0_i32_0 = arith.constant 0 : i32
    return %arg0, %c0_i32 : i32, i32
  }
}

</mosaic_0001>

<bundles_post_ra>
// kernel: tpu_custom_call.1
= control target key start
LH: loop header
LB: loop body
LE: loop exit
PB: predicated region body
PF: predicated region fallthrough
CT: control target
= control target key end

     0   :  { %8 = vsyncpa [#allocation3], 0  ;;  %s340_s0 = inlined_call_operand.hbm [shape: f32[16,32], index: 0, kind: input, shape index: {}]   ;;  %s341_s1 = inlined_call_operand.hbm [shape: f32[32,32], index: 1, kind: input, shape index: {}]   ;;  %s342_s2 = inlined_call_operand.vmem [shape: f32[1,32], index: 2, kind: input, shape index: {}]   ;;  %s343_s3 = inlined_call_operand.hbm [shape: f32[16,32], index: 3, kind: output, shape index: {}]  }
   0x1   :  { %9 = vsyncpa [#allocation6], 0 }
   0x2   :  { %10 = vsyncpa [#allocation4], 0  ;;  %s263_s12 = smov [#allocation2]   ;;  %s191_s16 = scalar_lea.hbm %s340_s0, 256 }
   0x3   :  { %s16_s13 = sshll.u32 %s263_s12, 4  ;;  %p192_p0 = scmp.ne.s32.totalorder %s340_s0, %s191_s16  ;;  %s17_s13 = int_to_ptr.vmem [resolvable:$true] %s16_s13 }
   0x4   :  { %p195_p1 = scmp.lt.u32.totalorder %s191_s16, %s340_s0 }
   0x6   :  { %p197_p2 = pnand %p195_p1, %p192_p0 }
   0x8   :  { %200 = shalt.err (!%p197_p2)
}
   0x9   :  { %s201_s21 = scalar_lea.vmem %s17_s13, 256  ;;  %p206_p4 = scmp.lt.s32.totalorder %s17_s13, %s17_s13 }
   0xa   :  { %p202_p3 = scmp.ne.s32.totalorder %s17_s13, %s201_s21  ;;  %p207_p5 = scmp.lt.s32.totalorder %s201_s21, %s201_s21 }
   0xc   :  { %p208_p6 = por %p207_p5, %p206_p4 }
   0xe   :  { %p209_p7 = pnand %p208_p6, %p202_p3 }
  0x10   :  { %212 = shalt.err (!%p209_p7)
}
  0x11   :  { %s264_s22 = smov 128   ;;  %s265_s23 = smov 8  }
  0x12   :  { %22 = dma.hbm_to_vmem [thread:$0]  %s340_s0, 256, %s17_s13, [#allocation3], %s264_s22, %s264_s22, %s265_s23  }
  0x13   :  { %s266_s26 = smov [#allocation5]   ;;  %s213_s30 = scalar_lea.hbm %s341_s1, 512 }
  0x14   :  { %s28_s27 = sshll.u32 %s266_s26, 4  ;;  %p214_p8 = scmp.ne.s32.totalorder %s341_s1, %s213_s30  ;;  %s29_s27 = int_to_ptr.vmem [resolvable:$true] %s28_s27 }
  0x15   :  { %p217_p9 = scmp.lt.u32.totalorder %s213_s30, %s341_s1 }
  0x17   :  { %p219_p10 = pnand %p217_p9, %p214_p8 }
  0x19   :  { %222 = shalt.err (!%p219_p10)
}
  0x1a   :  { %s223_s8 = scalar_lea.vmem %s29_s27, 512  ;;  %p228_p12 = scmp.lt.s32.totalorder %s29_s27, %s29_s27 }
  0x1b   :  { %p224_p11 = scmp.ne.s32.totalorder %s29_s27, %s223_s8  ;;  %p229_p13 = scmp.lt.s32.totalorder %s223_s8, %s223_s8 }
  0x1d   :  { %p230_p0 = por %p229_p13, %p228_p12 }
  0x1f   :  { %p231_p1 = pnand %p230_p0, %p224_p11 }
  0x21   :  { %234 = shalt.err (!%p231_p1)
}
  0x22   :  { %34 = dma.hbm_to_vmem [thread:$0]  %s341_s1, 512, %s29_s27, [#allocation6], %s264_s22, %s264_s22, %s265_s23  }
  0x23   :  { %257 = dma.done.wait [#allocation3], 256  }
  0x24   :  { %258 = vsyncadd [#allocation3], 4294967040 }
  0x25   :  { %259 = dma.done.wait [#allocation6], 512  }
  0x26   :  { %260 = vsyncadd [#allocation6], 4294966784  ;;  %vm56_vm0 = vcmask 261120   ;;  %v45_v0 = vld [vmem:[#allocation5] sm:$0xff]  ;;  %v46_v1 = vld [vmem:[#allocation5 + $0x8] sm:$0xff]  ;;  %s267_s11 = smov [#allocation7]  }
  0x27   :  { %v47_v2 = vld [vmem:[#allocation5 + $0x10] sm:$0xff]  ;;  %v178_v3 = vpack.c.bf16 %v46_v1, %v45_v0  ;;  %v48_v4 = vld [vmem:[#allocation5 + $0x18] sm:$0xff]  ;;  %s145_s12 = sshll.u32 %s267_s11, 4  ;;  %s146_s12 = int_to_ptr.vmem [resolvable:$true] %s145_s12 }
  0x28   :  { %v43_v5 = vld [vmem:[#allocation2] sm:$0xff]  ;;  %v182_v6 = vpack.c.bf16 %v48_v4, %v47_v2  ;;  %v44_v7 = vld [vmem:[#allocation2 + $0x8] sm:$0xff]  ;;  %s235_s13 = scalar_lea.vmem %s146_s12, 256  ;;  %p240_p3 = scmp.lt.s32.totalorder %s146_s12, %s146_s12 }
  0x29   :  { %175 = vmatprep.mubr.msk.f32.mxu0 %vm56_vm0, %v43_v5  ;;  %179 = vmatprep.subr.bf16.mxu0 %v178_v3  ;;  %v158_v8 = vld [vmem:[%s342_s2] ss:$0 sm:$0xff]  ;;  %p236_p2 = scmp.ne.s32.totalorder %s146_s12, %s235_s13  ;;  %p241_p4 = scmp.lt.s32.totalorder %s235_s13, %s235_s13 }
  0x2a   :  { %181 = vmatpush3.bf16.msra.mxu0 %v178_v3 }
  0x2b   :  { %183 = vmatprep.subr.bf16.mxu0 %v182_v6  ;;  %p242_p5 = por %p241_p4, %p240_p3 }
  0x2d   :  { %p243_p6 = pnand %p242_p5, %p236_p2 }
  0x2e   :  { %185 = vmatpush3.bf16.msra.mxu0 %v182_v6 }
  0x31   :  { %176 = vmatmul.mubr.msk.f32.vlgmr.msra.gmra.mrb[0].mxu0 %vm56_vm0, %v44_v7 }
 0x104   :  { %v177_v9 = vpop.f32.mrb[0].mxu0 }
 0x105   :  { %v135_v10 = vadd.f32 %v177_v9, %v158_v8  ;;  %v129_v11 = vpop.f32.mrb[1].mxu0 }
 0x106   :  { %v130_v12 = vadd.f32 %v158_v8, %v129_v11 }
 0x107   :  { %139 = vst.msk [vmem:[#allocation7 + $0x8] sm:$0xff] %vm56_vm0, %v135_v10 }
 0x108   :  { %138 = vst.msk [vmem:[#allocation7] sm:$0xff] %vm56_vm0, %v130_v12 }
 0x109   :  { %246 = shalt.err (!%p243_p6)
}
 0x10a   :  { %s247_s15 = scalar_lea.hbm %s343_s3, 256 }
 0x10b   :  { %p248_p7 = scmp.ne.s32.totalorder %s343_s3, %s247_s15  ;;  %p251_p8 = scmp.lt.u32.totalorder %s247_s15, %s343_s3 }
 0x10d   :  { %p253_p9 = pnand %p251_p8, %p248_p7 }
 0x10f   :  { %256 = shalt.err (!%p253_p9)
}
 0x110   :  { %151 = dma.vmem_to_hbm [thread:$0]  %s146_s12, 256, %s343_s3, [#allocation4], %s264_s22, %s264_s22, %s265_s23  }
 0x111   :  { %261 = dma.done.wait [#allocation4], 256  }
 0x112   :  { %262 = vsyncadd [#allocation4], 4294967040 }
 0x113   :  { %155 = vsyncpa [#allocation3], 1 }
 0x114   :  { %156 = vsyncpa [#allocation6], 1 }
 0x115   :  { %157 = vsyncpa [#allocation4], 1 }

</bundles_post_ra>
